<compile_context>
chip_gen: v7x
topology: tpu7x:2x2x1
jax: 0.10.0
libtpu: 0.0.40
codegen_flags: <defaults>
</compile_context>

<pallas_src>
import jax
import jax.numpy as jnp
from jax.experimental import pallas as pl
from jax.experimental.pallas import tpu as pltpu

IN_F, H1_F, H2_F, OUT_F = 128, 64, 32, 2
LANE = 128          # hidden widths are zero-padded to the 128-lane width
MAX_TILE_B = 2048   # rows per grid step (per-step overhead ~0.35 us amortized)


def _round_up(n, m):
    return ((n + m - 1) // m) * m


def _pad2(a, shape):
    return jnp.pad(a, ((0, shape[0] - a.shape[0]), (0, shape[1] - a.shape[1])))


def _mlp_kernel(x_ref, w1_ref, w2_ref, w3_ref, b12_ref, b3_ref, o_ref):
    # x arrives in f32; the bf16 cast is a VPU op hidden under the input DMA.
    x = x_ref[...].astype(jnp.bfloat16)
    b12 = b12_ref[...]                      # (2, 128) f32: [b1 ; b2]
    # fc1 + ReLU   (bf16 MXU, f32 accumulate / bias / ReLU)
    h1 = jnp.dot(x, w1_ref[...], preferred_element_type=jnp.float32)
    h1 = jnp.maximum(h1 + b12[0:1, :], 0.0).astype(jnp.bfloat16)
    # fc2 + ReLU
    h2 = jnp.dot(h1, w2_ref[...], preferred_element_type=jnp.float32)
    h2 = jnp.maximum(h2 + b12[1:2, :], 0.0).astype(jnp.bfloat16)
    # fc3: narrow (128 -> 2) matmul stored directly as the (tile_b, 2) output.
    h3 = jnp.dot(h2, w3_ref[...], preferred_element_type=jnp.float32)
    o_ref[...] = (h3 + b3_ref[...]).astype(o_ref.dtype)


def pack_params(params):
    """One-time padding / casting of weights for the kernel (not per call).

    Zero-padded hidden columns stay exactly zero through bias + ReLU, so the
    padded network computes the same logits as the unpadded one.
    """
    w1, b1, w2, b2, w3, b3 = params
    w1p = _pad2(w1, (IN_F, LANE)).astype(jnp.bfloat16)     # (128, 128)
    w2p = _pad2(w2, (LANE, LANE)).astype(jnp.bfloat16)     # (128, 128)
    w3p = _pad2(w3, (LANE, OUT_F)).astype(jnp.bfloat16)    # (128, 2)
    b12p = jnp.concatenate(
        [_pad2(b1, (1, LANE)), _pad2(b2, (1, LANE))], axis=0)  # (2, 128) f32
    b3p = b3.astype(jnp.float32)                           # (1, 2)
    return (w1p, w2p, w3p, b12p, b3p)


@jax.jit
def learner_forward(x, packed):
    """x: (B, 128) f32, packed = pack_params(params) -> (B, 2) f32 logits."""
    w1p, w2p, w3p, b12p, b3p = packed
    B = x.shape[0]

    # Batch tile: as large as possible, but >= 2 grid steps for bigger batches
    # so v7x's two TensorCores both get work on the "parallel" axis.  The grid
    # is cdiv-based; Pallas clips the DMAs of a partial last block, so no
    # wrapper-side padding of x (and no output slicing) is needed.
    if B <= 256:
        tile_b = _round_up(B, 8)
    else:
        tile_b = min(MAX_TILE_B, _round_up(pl.cdiv(B, 2), 8))
    grid = (pl.cdiv(B, tile_b),)

    const = lambda i: (0, 0)  # same block every step => stays VMEM-resident
    return pl.pallas_call(
        _mlp_kernel,
        out_shape=jax.ShapeDtypeStruct((B, OUT_F), jnp.float32),
        grid=grid,
        in_specs=[
            pl.BlockSpec((tile_b, IN_F), lambda i: (i, 0)),  # x (streamed)
            pl.BlockSpec((IN_F, LANE), const),               # w1
            pl.BlockSpec((LANE, LANE), const),               # w2
            pl.BlockSpec((LANE, OUT_F), const),              # w3
            pl.BlockSpec((2, LANE), const),                  # [b1 ; b2]
            pl.BlockSpec((1, OUT_F), const),                 # b3
        ],
        out_specs=pl.BlockSpec((tile_b, OUT_F), lambda i: (i, 0)),
        compiler_params=pltpu.CompilerParams(
            dimension_semantics=("parallel",)),
    )(x, w1p, w2p, w3p, b12p, b3p)


def init_params(key):
    """Deterministic init mirroring nn.Linear shapes.

    PyTorch stores W as (out, in); we store the transpose (in, out) so the
    kernel computes x @ W + b, matching x @ W_pt.T + b exactly.
    """
    dims = [(IN_F, H1_F), (H1_F, H2_F), (H2_F, OUT_F)]
    params = []
    for fan_in, fan_out in dims:
        kw, kb, key = jax.random.split(key, 3)
        bound = 1.0 / jnp.sqrt(fan_in)  # same range as PyTorch default init
        w = jax.random.uniform(kw, (fan_in, fan_out), jnp.float32, -bound, bound)
        b = jax.random.uniform(kb, (1, fan_out), jnp.float32, -bound, bound)
        params += [w, b]
    return tuple(params)


def learner_reference(x, params):
    """Pure-JAX f32 reference (PyTorch-equivalent semantics)."""
    w1, b1, w2, b2, w3, b3 = params
    h = jnp.maximum(x @ w1 + b1, 0.0)
    h = jnp.maximum(h @ w2 + b2, 0.0)
    return h @ w3 + b3


if __name__ == "__main__":
    key = jax.random.PRNGKey(0)
    kx, kx2, kp = jax.random.split(key, 3)
    params = init_params(kp)
    packed = pack_params(params)   # pad/cast weights once, not per call

    # Small single-tile case.
    batch = 8
    x = jax.random.normal(kx, (batch, IN_F), dtype=jnp.float32)
    out = jax.block_until_ready(learner_forward(x, packed))
    ref = learner_reference(x, params)
    assert out.shape == (batch, OUT_F), out.shape
    assert jnp.allclose(out, ref, atol=2e-2, rtol=2e-2), "mismatch vs reference (B=8)"

    # Multi-step grid with a partial last block (1064 rows, tile of 536).
    batch2 = 1064
    x2 = jax.random.normal(kx2, (batch2, IN_F), dtype=jnp.float32)
    out2 = jax.block_until_ready(learner_forward(x2, packed))
    ref2 = learner_reference(x2, params)
    assert out2.shape == (batch2, OUT_F), out2.shape
    assert jnp.allclose(out2, ref2, atol=2e-2, rtol=2e-2), "mismatch vs reference (B=1064)"

    print("KERNEL_OK")
</pallas_src>

<mosaic_0001>
module attributes {stable_mosaic.version = 11 : i64} {
  func.func @_mlp_kernel(%arg0: i32, %arg1: memref<8x128xf32, #tpu.memory_space<vmem>>, %arg2: memref<128x128xbf16, #tpu.memory_space<vmem>>, %arg3: memref<128x128xbf16, #tpu.memory_space<vmem>>, %arg4: memref<128x2xbf16, #tpu.memory_space<vmem>>, %arg5: memref<2x128xf32, #tpu.memory_space<vmem>>, %arg6: memref<1x2xf32, #tpu.memory_space<vmem>>, %arg7: memref<8x2xf32, #tpu.memory_space<vmem>>) attributes {dimension_semantics = [#tpu.dimension_semantics<parallel>], iteration_bounds = array<i64: 1>, scalar_prefetch = 0 : i64, scratch_operands = 0 : i64, tpu.core_type = #tpu.core_type<tc>, window_params = [{transform_indices = @transform_0, window_bounds = array<i64: 8, 128>}, {pipeline_mode = #tpu.pipeline_mode<synchronous>, transform_indices = @transform_1, window_bounds = array<i64: 128, 128>}, {pipeline_mode = #tpu.pipeline_mode<synchronous>, transform_indices = @transform_2, window_bounds = array<i64: 128, 128>}, {pipeline_mode = #tpu.pipeline_mode<synchronous>, transform_indices = @transform_3, window_bounds = array<i64: 128, 2>}, {pipeline_mode = #tpu.pipeline_mode<synchronous>, transform_indices = @transform_4, window_bounds = array<i64: 2, 128>}, {pipeline_mode = #tpu.pipeline_mode<synchronous>, transform_indices = @transform_5, window_bounds = array<i64: 1, 2>}, {transform_indices = @transform_6, window_bounds = array<i64: 8, 2>}]} {
    %c0 = arith.constant 0 : index
    %c0_0 = arith.constant 0 : index
    %0 = vector.load %arg1[%c0, %c0_0] : memref<8x128xf32, #tpu.memory_space<vmem>>, vector<8x128xf32>
    %1 = arith.truncf %0 : vector<8x128xf32> to vector<8x128xbf16>
    %c0_1 = arith.constant 0 : index
    %c0_2 = arith.constant 0 : index
    %2 = vector.load %arg5[%c0_1, %c0_2] : memref<2x128xf32, #tpu.memory_space<vmem>>, vector<2x128xf32>
    %c0_3 = arith.constant 0 : index
    %c0_4 = arith.constant 0 : index
    %3 = vector.load %arg2[%c0_3, %c0_4] : memref<128x128xbf16, #tpu.memory_space<vmem>>, vector<128x128xbf16>
    %cst = arith.constant dense<0.000000e+00> : vector<8x128xf32>
    %4 = tpu.matmul %1, %3, %cst {dimension_numbers = #tpu.dot_dimension_numbers<[1], [0], [0], [1], [0, 0, 1, 1], [], []>} : vector<8x128xbf16>, vector<128x128xbf16>, vector<8x128xf32> -> vector<8x128xf32>
    %5 = vector.extract_strided_slice %2 {offsets = [0, 0], sizes = [1, 128], strides = [1, 1]} : vector<2x128xf32> to vector<1x128xf32>
    %6 = vector.broadcast %5 : vector<1x128xf32> to vector<8x128xf32>
    %7 = arith.addf %4, %6 : vector<8x128xf32>
    %cst_5 = arith.constant 0.000000e+00 : f32
    %8 = vector.broadcast %cst_5 : f32 to vector<8x128xf32>
    %9 = arith.maximumf %7, %8 : vector<8x128xf32>
    %10 = arith.truncf %9 : vector<8x128xf32> to vector<8x128xbf16>
    %c0_6 = arith.constant 0 : index
    %c0_7 = arith.constant 0 : index
    %11 = vector.load %arg3[%c0_6, %c0_7] : memref<128x128xbf16, #tpu.memory_space<vmem>>, vector<128x128xbf16>
    %cst_8 = arith.constant dense<0.000000e+00> : vector<8x128xf32>
    %12 = tpu.matmul %10, %11, %cst_8 {dimension_numbers = #tpu.dot_dimension_numbers<[1], [0], [0], [1], [0, 0, 1, 1], [], []>} : vector<8x128xbf16>, vector<128x128xbf16>, vector<8x128xf32> -> vector<8x128xf32>
    %13 = vector.extract_strided_slice %2 {offsets = [1, 0], sizes = [1, 128], strides = [1, 1]} : vector<2x128xf32> to vector<1x128xf32>
    %14 = vector.broadcast %13 : vector<1x128xf32> to vector<8x128xf32>
    %15 = arith.addf %12, %14 : vector<8x128xf32>
    %cst_9 = arith.constant 0.000000e+00 : f32
    %16 = vector.broadcast %cst_9 : f32 to vector<8x128xf32>
    %17 = arith.maximumf %15, %16 : vector<8x128xf32>
    %18 = arith.truncf %17 : vector<8x128xf32> to vector<8x128xbf16>
    %c0_10 = arith.constant 0 : index
    %c0_11 = arith.constant 0 : index
    %19 = vector.load %arg4[%c0_10, %c0_11] : memref<128x2xbf16, #tpu.memory_space<vmem>>, vector<128x2xbf16>
    %cst_12 = arith.constant dense<0.000000e+00> : vector<8x2xf32>
    %20 = tpu.matmul %18, %19, %cst_12 {dimension_numbers = #tpu.dot_dimension_numbers<[1], [0], [0], [1], [0, 0, 1, 1], [], []>} : vector<8x128xbf16>, vector<128x2xbf16>, vector<8x2xf32> -> vector<8x2xf32>
    %c0_13 = arith.constant 0 : index
    %c0_14 = arith.constant 0 : index
    %21 = vector.load %arg6[%c0_13, %c0_14] : memref<1x2xf32, #tpu.memory_space<vmem>>, vector<1x2xf32>
    %22 = vector.broadcast %21 : vector<1x2xf32> to vector<8x2xf32>
    %23 = arith.addf %20, %22 : vector<8x2xf32>
    %c0_15 = arith.constant 0 : index
    %c0_16 = arith.constant 0 : index
    %24 = vector.load %arg7[%c0_15, %c0_16] : memref<8x2xf32, #tpu.memory_space<vmem>>, vector<8x2xf32>
    tpu.vector_store %arg7[%c0_15, %c0_16], %23 {strides = array<i32>} : memref<8x2xf32, #tpu.memory_space<vmem>>, vector<8x2xf32>,
    return
  }
  func.func @transform_0(%arg0: i32) -> (i32, i32) {
    %c0_i32 = arith.constant 0 : i32
    %c0_i32_0 = arith.constant 0 : i32
    return %arg0, %c0_i32 : i32, i32
  }
  func.func @transform_1(%arg0: i32) -> (i32, i32) {
    %c0_i32 = arith.constant 0 : i32
    %c0_i32_0 = arith.constant 0 : i32
    %c0_i32_1 = arith.constant 0 : i32
    return %c0_i32, %c0_i32_0 : i32, i32
  }
  func.func @transform_2(%arg0: i32) -> (i32, i32) {
    %c0_i32 = arith.constant 0 : i32
    %c0_i32_0 = arith.constant 0 : i32
    %c0_i32_1 = arith.constant 0 : i32
    return %c0_i32, %c0_i32_0 : i32, i32
  }
  func.func @transform_3(%arg0: i32) -> (i32, i32) {
    %c0_i32 = arith.constant 0 : i32
    %c0_i32_0 = arith.constant 0 : i32
    %c0_i32_1 = arith.constant 0 : i32
    return %c0_i32, %c0_i32_0 : i32, i32
  }
  func.func @transform_4(%arg0: i32) -> (i32, i32) {
    %c0_i32 = arith.constant 0 : i32
    %c0_i32_0 = arith.constant 0 : i32
    %c0_i32_1 = arith.constant 0 : i32
    return %c0_i32, %c0_i32_0 : i32, i32
  }
  func.func @transform_5(%arg0: i32) -> (i32, i32) {
    %c0_i32 = arith.constant 0 : i32
    %c0_i32_0 = arith.constant 0 : i32
    %c0_i32_1 = arith.constant 0 : i32
    return %c0_i32, %c0_i32_0 : i32, i32
  }
  func.func @transform_6(%arg0: i32) -> (i32, i32) {
    %c0_i32 = arith.constant 0 : i32
    %c0_i32_0 = arith.constant 0 : i32
    return %arg0, %c0_i32 : i32, i32
  }
}

</mosaic_0001>

<bundles_post_ra>
// kernel: learner_forward.1
= control target key start
LH: loop header
LB: loop body
LE: loop exit
PB: predicated region body
PF: predicated region fallthrough
CT: control target
= control target key end

     0   :  { %11 = vsyncpa [#allocation3], 0  ;;  %s741_s0 = inlined_call_operand.hbm [shape: f32[8,128], index: 0, kind: input, shape index: {}]   ;;  %s742_s1 = inlined_call_operand.vmem [shape: bf16[128,128], index: 1, kind: input, shape index: {}]   ;;  %s743_s2 = inlined_call_operand.hbm [shape: bf16[128,128], index: 2, kind: input, shape index: {}]   ;;  %s744_s3 = inlined_call_operand.vmem [shape: bf16[128,2], index: 3, kind: input, shape index: {}]   ;;  %s745_s4 = inlined_call_operand.vmem [shape: f32[2,128], index: 4, kind: input, shape index: {}]   ;;  %s746_s5 = inlined_call_operand.vmem [shape: f32[1,2], index: 5, kind: input, shape index: {}]   ;;  %s747_s6 = inlined_call_operand.vmem [shape: f32[8,2], index: 6, kind: output, shape index: {}]  }
   0x1   :  { %12 = vsyncpa [#allocation5], 0  ;;  %s582_s21 = smov [#allocation2]   ;;  %s583_s23 = smov [#allocation4]  }
   0x2   :  { %s19_s22 = sshll.u32 %s582_s21, 4  ;;  %s30_s24 = sshll.u32 %s583_s23, 4  ;;  %s20_s22 = int_to_ptr.vmem [resolvable:$true] %s19_s22  ;;  %s623_s24 = int_to_ptr.vmem [resolvable:$true] %s30_s24 }
   0x3   :  { %s534_s27 = scalar_lea.hbm %s741_s0, 128 }
   0x4   :  { %p535_p0 = scmp.ne.s32.totalorder %s741_s0, %s534_s27  ;;  %p538_p1 = scmp.lt.u32.totalorder %s534_s27, %s741_s0 }
   0x6   :  { %p540_p2 = pnand %p538_p1, %p535_p0 }
   0x8   :  { %543 = shalt.err (!%p540_p2)
}
   0x9   :  { %s544_s8 = scalar_lea.vmem %s20_s22, 128  ;;  %p549_p4 = scmp.lt.s32.totalorder %s20_s22, %s20_s22 }
   0xa   :  { %p545_p3 = scmp.ne.s32.totalorder %s20_s22, %s544_s8  ;;  %p550_p5 = scmp.lt.s32.totalorder %s544_s8, %s544_s8 }
   0xc   :  { %p551_p6 = por %p550_p5, %p549_p4 }
   0xe   :  { %p552_p7 = pnand %p551_p6, %p545_p3 }
  0x10   :  { %555 = shalt.err (!%p552_p7)
}
  0x11   :  { %22 = dma.hbm_to_vmem [thread:$0]  %s741_s0, 128, %s20_s22, [#allocation3]  }
  0x12   :  { %s556_s13 = scalar_lea.hbm %s743_s2, 1024 }
  0x13   :  { %p557_p8 = scmp.ne.s32.totalorder %s743_s2, %s556_s13  ;;  %p560_p9 = scmp.lt.u32.totalorder %s556_s13, %s743_s2 }
  0x15   :  { %p562_p10 = pnand %p560_p9, %p557_p8 }
  0x17   :  { %565 = shalt.err (!%p562_p10)
}
  0x18   :  { %s566_s18 = scalar_lea.vmem %s623_s24, 1024  ;;  %p571_p12 = scmp.lt.s32.totalorder %s623_s24, %s623_s24 }
  0x19   :  { %p567_p11 = scmp.ne.s32.totalorder %s623_s24, %s566_s18  ;;  %p572_p13 = scmp.lt.s32.totalorder %s566_s18, %s566_s18 }
  0x1b   :  { %p573_p0 = por %p572_p13, %p571_p12 }
  0x1d   :  { %p574_p1 = pnand %p573_p0, %p567_p11 }
  0x1f   :  { %577 = shalt.err (!%p574_p1)
}
  0x20   :  { %s584_s0 = smov 64   ;;  %s585_s19 = smov 4  }
  0x21   :  { %36 = dma.hbm_to_vmem [thread:$0]  %s743_s2, 1024, %s623_s24, [#allocation5], %s584_s0, %s584_s0, %s585_s19  }
  0x22   :  { %578 = dma.done.wait [#allocation3], 128  }
  0x23   :  { %579 = vsyncadd [#allocation3], 4294967168 }
  0x24   :  { %580 = dma.done.wait [#allocation5], 1024  }
  0x25   :  { %581 = vsyncadd [#allocation5], 4294966272  ;;  %v586_v0 = vmov 0.0   ;;  %vm587_vm0 = vmmov 0   ;;  %v510_v1 = vld [vmem:[%s742_s1] sm:$0xff]   ;;  %v511_v2 = vld [vmem:[%s742_s1 + $0x8] sm:$0xff]   ;;  %v69_v25 = vlaneseq }
  0x26   :  { %444 = vmatprep.subr.bf16.mxu0 %v586_v0  ;;  %460 = vmatprep.mubr.msk.bf16.mxu0 %vm587_vm0, %v586_v0  ;;  %v512_v3 = vld [vmem:[%s742_s1 + $0x10] sm:$0xff]   ;;  %v518_v4 = vld [vmem:[#allocation4] sm:$0xff]   ;;  %v513_v5 = vld [vmem:[%s742_s1 + $0x18] sm:$0xff]   ;;  %vm384_vm1 = vcmask 15360  }
  0x27   :  { %464 = vmatprep.subr.bf16.mxu1 %v586_v0  ;;  %480 = vmatprep.mubr.msk.bf16.mxu1 %vm587_vm0, %v586_v0  ;;  %v519_v6 = vld [vmem:[#allocation4 + $0x8] sm:$0xff]   ;;  %v514_v7 = vld [vmem:[%s742_s1 + $0x20] sm:$0xff]   ;;  %v520_v8 = vld [vmem:[#allocation4 + $0x10] sm:$0xff]   ;;  %v70_v26 = vshrl.u32 %v69_v25, 7 }
  0x28   :  { %445 = vmatpush3.bf16.msra.mxu0 %v510_v1  ;;  %465 = vmatpush3.bf16.msra.mxu1 %v518_v4  ;;  %v515_v9 = vld [vmem:[%s742_s1 + $0x28] sm:$0xff]   ;;  %v521_v10 = vld [vmem:[#allocation4 + $0x18] sm:$0xff]   ;;  %v516_v11 = vld [vmem:[%s742_s1 + $0x30] sm:$0xff]  }
  0x29   :  { %446 = vmatprep.subr.bf16.mxu0 %v586_v0  ;;  %466 = vmatprep.subr.bf16.mxu1 %v586_v0  ;;  %v522_v12 = vld [vmem:[#allocation4 + $0x20] sm:$0xff]   ;;  %v517_v13 = vld [vmem:[%s742_s1 + $0x38] sm:$0xff]   ;;  %v50_v14 = vld [vmem:[#allocation2] sm:$0xff]  ;;  %v71_v27 = vsub.s32 0, %v70_v26  ;;  %v181_v39 = vsub.s32 1, %v70_v26 }
  0x2a   :  { %v523_v15 = vld [vmem:[#allocation4 + $0x28] sm:$0xff]   ;;  %v51_v16 = vpack.c.bf16 %v50_v14, %v50_v14  ;;  %v524_v17 = vld [vmem:[#allocation4 + $0x30] sm:$0xff]   ;;  %v525_v18 = vld [vmem:[#allocation4 + $0x38] sm:$0xff]  }
  0x2b   :  { %v526_v19 = vld [vmem:[%s744_s3] sm:$0xff]   ;;  %v527_v20 = vld [vmem:[%s744_s3 + $0x8] sm:$0xff]   ;;  %v528_v21 = vld [vmem:[%s744_s3 + $0x10] sm:$0xff]  }
  0x2c   :  { %447 = vmatpush3.bf16.msra.mxu0 %v511_v2  ;;  %467 = vmatpush3.bf16.msra.mxu1 %v519_v6  ;;  %v529_v22 = vld [vmem:[%s744_s3 + $0x18] sm:$0xff]   ;;  %v530_v23 = vld [vmem:[%s744_s3 + $0x20] sm:$0xff]   ;;  %v531_v24 = vld [vmem:[%s744_s3 + $0x28] sm:$0xff]  }
  0x2d   :  { %448 = vmatprep.subr.bf16.mxu0 %v586_v0  ;;  %468 = vmatprep.subr.bf16.mxu1 %v586_v0  ;;  %v52_v28 = vld [vmem:[%s745_s4] sm:$0x3]  ;;  %v532_v37 = vld [vmem:[%s744_s3 + $0x30] sm:$0xff]   ;;  %v533_v38 = vld [vmem:[%s744_s3 + $0x38] sm:$0xff]  }
  0x2e   :  { %v72_v29 = vrot.slane %v52_v28, %v71_v27  ;;  %v182_v40 = vrot.slane %v52_v28, %v181_v39  ;;  %v408_v48 = vld [vmem:[%s746_s5] ss:$0 sm:$0xff] }
  0x30   :  { %449 = vmatpush3.bf16.msra.mxu0 %v512_v3  ;;  %469 = vmatpush3.bf16.msra.mxu1 %v520_v8 }
  0x31   :  { %450 = vmatprep.subr.bf16.mxu0 %v586_v0  ;;  %470 = vmatprep.subr.bf16.mxu1 %v586_v0 }
  0x34   :  { %451 = vmatpush3.bf16.msra.mxu0 %v513_v5  ;;  %471 = vmatpush3.bf16.msra.mxu1 %v521_v10 }
  0x35   :  { %452 = vmatprep.subr.bf16.mxu0 %v586_v0  ;;  %472 = vmatprep.subr.bf16.mxu1 %v586_v0 }
  0x38   :  { %453 = vmatpush3.bf16.msra.mxu0 %v514_v7  ;;  %473 = vmatpush3.bf16.msra.mxu1 %v522_v12 }
  0x39   :  { %454 = vmatprep.subr.bf16.mxu0 %v586_v0  ;;  %474 = vmatprep.subr.bf16.mxu1 %v586_v0 }
  0x3c   :  { %455 = vmatpush3.bf16.msra.mxu0 %v515_v9  ;;  %475 = vmatpush3.bf16.msra.mxu1 %v523_v15 }
  0x3d   :  { %456 = vmatprep.subr.bf16.mxu0 %v586_v0  ;;  %476 = vmatprep.subr.bf16.mxu1 %v586_v0 }
  0x40   :  { %457 = vmatpush3.bf16.msra.mxu0 %v516_v11  ;;  %477 = vmatpush3.bf16.msra.mxu1 %v524_v17 }
  0x41   :  { %458 = vmatprep.subr.bf16.mxu0 %v586_v0  ;;  %478 = vmatprep.subr.bf16.mxu1 %v586_v0 }
  0x44   :  { %459 = vmatpush3.bf16.msra.mxu0 %v517_v13  ;;  %479 = vmatpush3.bf16.msra.mxu1 %v525_v18 }
  0x45   :  { %484 = vmatprep.subr.bf16.mxu0 %v586_v0 }
  0x47   :  { %461 = vmatmul.mubr.bf16.vlgmr.msra.gmra.mrb[0].mxu0 %v51_v16 }
  0x48   :  { %500 = vmatprep.mubr.msk.bf16.mxu0 %vm587_vm0, %v586_v0  ;;  %485 = vmatpush3.bf16.msra.mxu0 %v526_v19 }
  0x49   :  { %486 = vmatprep.subr.bf16.mxu0 %v586_v0 }
  0x4c   :  { %487 = vmatpush3.bf16.msra.mxu0 %v527_v20 }
  0x4d   :  { %488 = vmatprep.subr.bf16.mxu0 %v586_v0 }
  0x50   :  { %489 = vmatpush3.bf16.msra.mxu0 %v528_v21 }
  0x51   :  { %490 = vmatprep.subr.bf16.mxu0 %v586_v0 }
  0x54   :  { %491 = vmatpush3.bf16.msra.mxu0 %v529_v22 }
  0x55   :  { %492 = vmatprep.subr.bf16.mxu0 %v586_v0 }
  0x58   :  { %493 = vmatpush3.bf16.msra.mxu0 %v530_v23 }
  0x59   :  { %494 = vmatprep.subr.bf16.mxu0 %v586_v0 }
  0x5c   :  { %495 = vmatpush3.bf16.msra.mxu0 %v531_v24 }
  0x5d   :  { %496 = vmatprep.subr.bf16.mxu0 %v586_v0 }
  0x60   :  { %497 = vmatpush3.bf16.msra.mxu0 %v532_v37 }
  0x61   :  { %498 = vmatprep.subr.bf16.mxu0 %v586_v0 }
  0x64   :  { %499 = vmatpush3.bf16.msra.mxu0 %v533_v38 }
 0x11a   :  { %v155_v30 = vpop.f32.mrb[0].mxu0 }
 0x11b   :  { %v156_v31 = vadd.f32 %v155_v30, %v72_v29  ;;  %v462_v32 = vpop.f32.mrb[1].mxu0 }
 0x11c   :  { %v158_v33 = vpop.f32.mrb[2].mxu0 }
 0x11d   :  { %v161_v34 = vmax.f32 %v156_v31, 0.0  ;;  %v463_v35 = vpop.f32.mrb[3].mxu0 }
 0x11f   :  { %v162_v36 = vpack.c.bf16 %v161_v34, %v161_v34 }
 0x121   :  { %481 = vmatmul.mubr.bf16.vlgmr.msra.gmra.mrb[0].mxu1 %v162_v36 }
 0x1f4   :  { %v265_v41 = vpop.f32.mrb[0].mxu1 }
 0x1f5   :  { %v266_v42 = vadd.f32 %v265_v41, %v182_v40  ;;  %v482_v43 = vpop.f32.mrb[1].mxu1 }
 0x1f6   :  { %v268_v44 = vpop.f32.mrb[2].mxu1 }
 0x1f7   :  { %v271_v45 = vmax.f32 %v266_v42, 0.0  ;;  %v483_v46 = vpop.f32.mrb[3].mxu1 }
 0x1f9   :  { %v272_v47 = vpack.c.bf16 %v271_v45, %v271_v45 }
 0x1fb   :  { %501 = vmatmul.mubr.bf16.vlgmr.msra.gmra.mrb[4].mxu0 %v272_v47 }
 0x2ce   :  { %v378_v49 = vpop.f32.mrb[4].mxu0 }
 0x2cf   :  { %v379_v50 = vadd.f32 %v408_v48, %v378_v49  ;;  %v502_v51 = vpop.f32.mrb[5].mxu0 }
 0x2d0   :  { %v381_v52 = vpop.f32.mrb[6].mxu0 }
 0x2d1   :  { %385 = vst.msk [vmem:[%s747_s6] sm:$0xff] %vm384_vm1, %v379_v50  ;;  %v503_v53 = vpop.f32.mrb[7].mxu0 }
 0x2d2   :  { %390 = vsyncpa [#allocation3], 1 }
 0x2d3   :  { %391 = vsyncpa [#allocation5], 1 }

</bundles_post_ra>
